<compile_context>
chip_gen: v7x
topology: tpu7x:2x2x1
jax: 0.10.0
libtpu: 0.0.40
codegen_flags: <defaults>
</compile_context>

<pallas_src>
import functools

import jax
import jax.numpy as jnp
from jax import lax
from jax.experimental import pallas as pl
from jax.experimental.pallas import tpu as pltpu


def _bce_kernel(logit_ref, target_ref, out_ref, acc_ref, *,
                tail_valid, compute_dtype):
    """Grid = (N, num_tiles). program_id(0)=batch n, program_id(1)=tile j.

    Dense layout (HW % 128 == 0):
        logit_ref : (1, C, tile_rows, 128)   logits (f32 or bf16)
        target_ref: (1, 1, tile_rows, 128)   integer labels
        acc_ref   : (C, tile_rows, 128) f32  VMEM accumulator
    Fallback layout:
        logit_ref : (1, C, tile_hw), target_ref: (1, 1, tile_hw),
        acc_ref   : (C, tile_hw) f32
    out_ref: (1, 1, 1[, 1]) f32 per-batch partial sum, written on the last tile.
    tail_valid: None if every tile is fully in-range (static), otherwise the
        number of valid positions along axis 1 of the block in the LAST tile.
    """
    j = pl.program_id(1)
    last = pl.num_programs(1) - 1

    @pl.when(j == 0)
    def _():
        acc_ref[...] = jnp.zeros_like(acc_ref)

    x = logit_ref[0].astype(compute_dtype)      # (C, ...)
    t = target_ref[0].astype(jnp.int32)         # (1, ...)

    # one-hot target via compare against the class index on axis 0
    cls = lax.broadcasted_iota(jnp.int32, x.shape, 0)
    z = (t == cls).astype(compute_dtype)

    # numerically stable BCE-with-logits: max(x,0) - x*z + log1p(exp(-|x|))
    bce = (jnp.maximum(x, 0.0) - x * z
           + jnp.log1p(jnp.exp(-jnp.abs(x)))).astype(jnp.float32)

    if tail_valid is None:
        # No padded tail anywhere: fully unmasked hot path.
        acc_ref[...] += bce
    else:
        @pl.when(j != last)
        def _():
            acc_ref[...] += bce

        @pl.when(j == last)
        def _():
            # Only the final tile reads past the array extent via BlockSpec;
            # discard those (possibly garbage) positions before accumulating.
            pos = lax.broadcasted_iota(jnp.int32, bce.shape, 1)
            acc_ref[...] += jnp.where(pos < tail_valid, bce, 0.0)

    @pl.when(j == last)
    def _():
        # Epilogue (once per batch): drop class 0 (reference loop starts at 1)
        # and reduce to the per-batch partial sum.
        acc = acc_ref[...]
        cls_a = lax.broadcasted_iota(jnp.int32, acc.shape, 0)
        total = jnp.sum(jnp.where(cls_a >= 1, acc, 0.0))
        out_ref[...] = jnp.full(out_ref.shape, total, dtype=jnp.float32)


def multi_class_bce_loss(logit, target, *, bf16_math=True):
    """logit: (N, C, H, W) float (f32 or bf16); target: (N, H, W) int. Scalar loss.

    Caller contract for memory-bound chips (v5e especially): pass logits as
    bf16 and targets as the narrowest integer dtype that holds num_classes
    (int8/uint8 for C<=127/255).  The kernel widens in VMEM, so narrow inputs
    only shrink the DMA bytes.  Set bf16_math=False on v5e (no bf16 VPU/EUP);
    on v6e/v7x bf16 math roughly halves the binding VPU/EUP work.
    """
    N, C, H, W = logit.shape
    assert target.shape == (N, H, W)
    HW = H * W

    logit_bytes = jnp.dtype(logit.dtype).itemsize
    target_bytes = jnp.dtype(target.dtype).itemsize
    compute_dtype = (jnp.bfloat16
                     if (bf16_math and logit.dtype == jnp.bfloat16)
                     else jnp.float32)

    # VMEM resident per spatial element per grid step:
    #   2x (double-buffered) logit block + 2x target block + f32 accumulator.
    per_elem = 2 * C * logit_bytes + 2 * target_bytes + 4 * C
    vmem_budget = 8 * 1024 * 1024   # keep well under the smallest default scope

    dense = (HW % 128 == 0)
    if dense:
        rows = HW // 128
        row_align = 16 if logit.dtype == jnp.bfloat16 else 8
        per_row = 128 * per_elem
        cap_rows = max(row_align,
                       min(512, vmem_budget // per_row) // row_align * row_align)
        tile_rows = rows if rows <= cap_rows else cap_rows
        num_tiles = pl.cdiv(rows, tile_rows)
        tail = rows - (num_tiles - 1) * tile_rows
        tail_valid = None if tail == tile_rows else tail

        # Free reshapes of contiguous NCHW / NHW -- no transpose, no extra HBM pass.
        logit_r = logit.reshape(N, C, rows, 128)
        target_r = target.reshape(N, 1, rows, 128)
        in_specs = [
            pl.BlockSpec((1, C, tile_rows, 128), lambda n, j: (n, 0, j, 0)),
            pl.BlockSpec((1, 1, tile_rows, 128), lambda n, j: (n, 0, j, 0)),
        ]
        out_shape = jax.ShapeDtypeStruct((N, 1, 1, 1), jnp.float32)
        out_spec = pl.BlockSpec((1, 1, 1, 1), lambda n, j: (n, 0, 0, 0))
        scratch = [pltpu.VMEM((C, tile_rows, 128), jnp.float32)]
        footprint = tile_rows * per_row
    else:
        # Fallback: C on the sublane axis, spatial on lanes (HW not 128-aligned).
        cap_hw = max(128, min(65536, vmem_budget // per_elem) // 128 * 128)
        tile_hw = HW if HW <= cap_hw else cap_hw
        num_tiles = pl.cdiv(HW, tile_hw)
        tail = HW - (num_tiles - 1) * tile_hw
        tail_valid = None if tail == tile_hw else tail

        logit_r = logit.reshape(N, C, HW)
        target_r = target.reshape(N, 1, HW)
        in_specs = [
            pl.BlockSpec((1, C, tile_hw), lambda n, j: (n, 0, j)),
            pl.BlockSpec((1, 1, tile_hw), lambda n, j: (n, 0, j)),
        ]
        out_shape = jax.ShapeDtypeStruct((N, 1, 1), jnp.float32)
        out_spec = pl.BlockSpec((1, 1, 1), lambda n, j: (n, 0, 0))
        scratch = [pltpu.VMEM((C, tile_hw), jnp.float32)]
        footprint = tile_hw * per_elem

    # Only raise the scoped-VMEM limit if the real footprint needs it.
    vmem_limit = None
    if footprint > 12 * 1024 * 1024:
        vmem_limit = footprint + 4 * 1024 * 1024

    kernel = functools.partial(_bce_kernel, tail_valid=tail_valid,
                               compute_dtype=compute_dtype)

    partials = pl.pallas_call(
        kernel,
        out_shape=out_shape,
        grid_spec=pltpu.PrefetchScalarGridSpec(
            num_scalar_prefetch=0,
            grid=(N, num_tiles),
            in_specs=in_specs,
            out_specs=out_spec,
            scratch_shapes=scratch,
        ),
        compiler_params=pltpu.CompilerParams(
            dimension_semantics=("parallel", "arbitrary"),
            vmem_limit_bytes=vmem_limit,
        ),
    )(logit_r, target_r)

    return jnp.sum(partials) / (N * HW)


def _reference_loss(logit, target, num_classes):
    # pure-JAX reference mirroring the PyTorch module exactly
    onehot = jax.nn.one_hot(target, num_classes, dtype=jnp.float32)   # (N,H,W,C)
    onehot = jnp.transpose(onehot, (0, 3, 1, 2))                      # (N,C,H,W)
    loss = 0.0
    for i in range(1, num_classes):
        x = logit[:, i].astype(jnp.float32)
        z = onehot[:, i]
        bce = jnp.maximum(x, 0.0) - x * z + jnp.log1p(jnp.exp(-jnp.abs(x)))
        loss += jnp.mean(bce)
    return loss


if __name__ == "__main__":
    num_classes = 4
    N, C, H, W = 2, num_classes, 16, 16

    key = jax.random.PRNGKey(0)
    k1, k2 = jax.random.split(key)
    logit = jax.random.normal(k1, (N, C, H, W), dtype=jnp.float32)
    target = jax.random.randint(k2, (N, H, W), 0, num_classes, dtype=jnp.int32)

    loss = multi_class_bce_loss(logit, target)
    loss = jax.block_until_ready(loss)

    ref = _reference_loss(logit, target, num_classes)
    assert jnp.allclose(loss, ref, rtol=1e-5, atol=1e-5), (loss, ref)

    print("KERNEL_OK")
</pallas_src>

<mosaic_0001>
module attributes {stable_mosaic.version = 11 : i64} {
  func.func @_bce_kernel(%arg0: i32, %arg1: i32, %arg2: memref<1x4x2x128xf32, #tpu.memory_space<vmem>>, %arg3: memref<1x1x2x128xi32, #tpu.memory_space<vmem>>, %arg4: memref<1x1x1x1xf32, #tpu.memory_space<vmem>>, %arg5: memref<4x2x128xf32, #tpu.memory_space<vmem>>) attributes {dimension_semantics = [#tpu.dimension_semantics<parallel>, #tpu.dimension_semantics<arbitrary>], iteration_bounds = array<i64: 2, 1>, scalar_prefetch = 0 : i64, scratch_operands = 1 : i64, tpu.core_type = #tpu.core_type<tc>, window_params = [{transform_indices = @transform_0, window_bounds = array<i64: 1, 4, 2, 128>}, {transform_indices = @transform_1, window_bounds = array<i64: 1, 1, 2, 128>}, {transform_indices = @transform_2, window_bounds = array<i64: 1, 1, 1, 1>}]} {
    %c0_i32 = arith.constant 0 : i32
    %0 = arith.cmpi eq, %arg1, %c0_i32 : i32
    %1 = arith.extui %0 : i1 to i32
    %c0_i32_0 = arith.constant 0 : i32
    %2 = arith.cmpi ne, %1, %c0_i32_0 : i32
    scf.if %2 {
      %cst_17 = arith.constant 0.000000e+00 : f32
      %28 = vector.broadcast %cst_17 : f32 to vector<4x2x128xf32>
      %c0_18 = arith.constant 0 : index
      %c0_19 = arith.constant 0 : index
      %c0_20 = arith.constant 0 : index
      %29 = vector.load %arg5[%c0_18, %c0_19, %c0_20] : memref<4x2x128xf32, #tpu.memory_space<vmem>>, vector<4x2x128xf32>
      tpu.vector_store %arg5[%c0_18, %c0_19, %c0_20], %28 {strides = array<i32>} : memref<4x2x128xf32, #tpu.memory_space<vmem>>, vector<4x2x128xf32>,
    } else {
    }
    %c0 = arith.constant 0 : index
    %c0_1 = arith.constant 0 : index
    %c0_2 = arith.constant 0 : index
    %c0_3 = arith.constant 0 : index
    %3 = vector.load %arg2[%c0, %c0_1, %c0_2, %c0_3] : memref<1x4x2x128xf32, #tpu.memory_space<vmem>>, vector<1x4x2x128xf32>
    %4 = vector.shape_cast %3 : vector<1x4x2x128xf32> to vector<4x2x128xf32>
    %c0_4 = arith.constant 0 : index
    %c0_5 = arith.constant 0 : index
    %c0_6 = arith.constant 0 : index
    %c0_7 = arith.constant 0 : index
    %5 = vector.load %arg3[%c0_4, %c0_5, %c0_6, %c0_7] : memref<1x1x2x128xi32, #tpu.memory_space<vmem>>, vector<1x1x2x128xi32>
    %6 = vector.shape_cast %5 : vector<1x1x2x128xi32> to vector<1x2x128xi32>
    %7 = tpu.iota {dimensions = array<i32: 0>} : vector<4x2x128xi32>
    %8 = vector.broadcast %6 : vector<1x2x128xi32> to vector<4x2x128xi32>
    %9 = arith.cmpi eq, %8, %7 : vector<4x2x128xi32>
    %10 = arith.extui %9 : vector<4x2x128xi1> to vector<4x2x128xi32>
    %11 = arith.sitofp %10 : vector<4x2x128xi32> to vector<4x2x128xf32>
    %cst = arith.constant 0.000000e+00 : f32
    %12 = vector.broadcast %cst : f32 to vector<4x2x128xf32>
    %13 = arith.maximumf %4, %12 : vector<4x2x128xf32>
    %14 = arith.mulf %4, %11 : vector<4x2x128xf32>
    %15 = arith.subf %13, %14 : vector<4x2x128xf32>
    %16 = math.absf %4 : vector<4x2x128xf32>
    %cst_8 = arith.constant 0.000000e+00 : f32
    %17 = vector.broadcast %cst_8 : f32 to vector<4x2x128xf32>
    %18 = arith.subf %17, %16 : vector<4x2x128xf32>
    %19 = math.exp %18 : vector<4x2x128xf32>
    %20 = math.log1p %19 : vector<4x2x128xf32>
    %21 = arith.addf %15, %20 : vector<4x2x128xf32>
    %c0_9 = arith.constant 0 : index
    %c0_10 = arith.constant 0 : index
    %c0_11 = arith.constant 0 : index
    %22 = vector.load %arg5[%c0_9, %c0_10, %c0_11] : memref<4x2x128xf32, #tpu.memory_space<vmem>>, vector<4x2x128xf32>
    %23 = arith.addf %22, %21 : vector<4x2x128xf32>
    %c0_12 = arith.constant 0 : index
    %c0_13 = arith.constant 0 : index
    %c0_14 = arith.constant 0 : index
    %24 = vector.load %arg5[%c0_12, %c0_13, %c0_14] : memref<4x2x128xf32, #tpu.memory_space<vmem>>, vector<4x2x128xf32>
    tpu.vector_store %arg5[%c0_12, %c0_13, %c0_14], %23 {strides = array<i32>} : memref<4x2x128xf32, #tpu.memory_space<vmem>>, vector<4x2x128xf32>,
    %c0_i32_15 = arith.constant 0 : i32
    %25 = arith.cmpi eq, %arg1, %c0_i32_15 : i32
    %26 = arith.extui %25 : i1 to i32
    %c0_i32_16 = arith.constant 0 : i32
    %27 = arith.cmpi ne, %26, %c0_i32_16 : i32
    scf.if %27 {
      %c0_17 = arith.constant 0 : index
      %c0_18 = arith.constant 0 : index
      %c0_19 = arith.constant 0 : index
      %28 = vector.load %arg5[%c0_17, %c0_18, %c0_19] : memref<4x2x128xf32, #tpu.memory_space<vmem>>, vector<4x2x128xf32>
      %29 = tpu.iota {dimensions = array<i32: 0>} : vector<4x2x128xi32>
      %c1_i32 = arith.constant 1 : i32
      %30 = vector.broadcast %c1_i32 : i32 to vector<4x2x128xi32>
      %31 = arith.cmpi sge, %29, %30 : vector<4x2x128xi32>
      %cst_20 = arith.constant 0.000000e+00 : f32
      %32 = vector.broadcast %cst_20 : f32 to vector<4x2x128xf32>
      %33 = arith.select %31, %28, %32 : vector<4x2x128xi1>, vector<4x2x128xf32>
      %34 = vector.shape_cast %33 : vector<4x2x128xf32> to vector<1x4x2x128xf32>
      %cst_21 = arith.constant dense<0.000000e+00> : vector<1xf32>
      %35 = vector.multi_reduction <add>, %34, %cst_21 [1, 2, 3] : vector<1x4x2x128xf32> to vector<1xf32>
      %36 = vector.shape_cast %35 : vector<1xf32> to vector<1x1x1x1xf32>
      %37 = vector.extract %36[0, 0, 0, 0] : f32 from vector<1x1x1x1xf32>
      %38 = vector.broadcast %37 : f32 to vector<1x1x1x1xf32>
      %c0_22 = arith.constant 0 : index
      %c0_23 = arith.constant 0 : index
      %c0_24 = arith.constant 0 : index
      %c0_25 = arith.constant 0 : index
      %39 = vector.load %arg4[%c0_22, %c0_23, %c0_24, %c0_25] : memref<1x1x1x1xf32, #tpu.memory_space<vmem>>, vector<1x1x1x1xf32>
      tpu.vector_store %arg4[%c0_22, %c0_23, %c0_24, %c0_25], %38 {strides = array<i32>} : memref<1x1x1x1xf32, #tpu.memory_space<vmem>>, vector<1x1x1x1xf32>,
    } else {
    }
    return
  }
  func.func @transform_0(%arg0: i32, %arg1: i32) -> (i32, i32, i32, i32) {
    %c0_i32 = arith.constant 0 : i32
    %c0_i32_0 = arith.constant 0 : i32
    %c0_i32_1 = arith.constant 0 : i32
    return %arg0, %c0_i32, %arg1, %c0_i32_0 : i32, i32, i32, i32
  }
  func.func @transform_1(%arg0: i32, %arg1: i32) -> (i32, i32, i32, i32) {
    %c0_i32 = arith.constant 0 : i32
    %c0_i32_0 = arith.constant 0 : i32
    %c0_i32_1 = arith.constant 0 : i32
    return %arg0, %c0_i32, %arg1, %c0_i32_0 : i32, i32, i32, i32
  }
  func.func @transform_2(%arg0: i32, %arg1: i32) -> (i32, i32, i32, i32) {
    %c0_i32 = arith.constant 0 : i32
    %c0_i32_0 = arith.constant 0 : i32
    %c0_i32_1 = arith.constant 0 : i32
    %c0_i32_2 = arith.constant 0 : i32
    return %arg0, %c0_i32, %c0_i32_0, %c0_i32_1 : i32, i32, i32, i32
  }
}

</mosaic_0001>

<bundles_post_ra>
// kernel: tpu_custom_call.1
= control target key start
LH: loop header
LB: loop body
LE: loop exit
PB: predicated region body
PF: predicated region fallthrough
CT: control target
= control target key end

     0   :  { %7 = vsyncpa [#allocation4], 0  ;;  %s876_s0 = inlined_call_operand.hbm [shape: f32[2,4,2,128], index: 0, kind: input, shape index: {}]   ;;  %s877_s1 = inlined_call_operand.hbm [shape: s32[2,1,2,128], index: 1, kind: input, shape index: {}]   ;;  %s878_s2 = inlined_call_operand.vmem [shape: f32[2,1,1,1], index: 2, kind: output, shape index: {}]  }
   0x1   :  { %9 = vsyncpa [#allocation4 + $0x1], 0 }
   0x2   :  { %10 = vsyncpa [#allocation6], 0 }
   0x3   :  { %12 = vsyncpa [#allocation6 + $0x1], 0  ;;  %s680_s9 = smov 0   ;;  %s682_s10 = smov 0  }
   0x4   :  { %s684_s11 = smov 0   ;;  %s686_s12 = smov 0  }
   0x5   :  { %s688_s13 = smov 0   ;;  %s690_s14 = smov 0  }
   0x6 LB: > { %s444_s15 = sadd.s32 4294967295, %s658_s14   ;;  %s30_s16 = sadd.s32 1, %s654_s13  ;;  %s658_s14 = sphi %s690_s14, %s18_s14   ;;  %s654_s13 = sphi %s688_s13, %s894_s13   ;;  %s650_s12 = sphi %s686_s12, %s893_s12   ;;  %s646_s11 = sphi %s684_s11, %s892_s11   ;;  %s642_s10 = sphi %s682_s10, %s891_s10   ;;  %s638_s9 = sphi %s680_s9, %s890_s9  }
   0x7   : > { %p32_p0 = scmp.ge.s32.totalorder %s30_s16, 2  ;;  %s39_s17 = sadd.s32 1, %s646_s11 }
   0x8   : > { %p46_p1 = scmp.ne.s32.totalorder %s646_s11, %s642_s10  ;;  %p47_p2 = scmp.eq.s32.totalorder %s658_s14, 0 }
   0x9   : > { %s896_s16 = smov (%p32_p0, %s30_s16), 0  ;;  %p52_p4 = scmp.ne.s32.totalorder %s642_s10, %s638_s9 }
   0xa   : > { %p716_p3 = por %p47_p2, %p46_p1  ;;  %s34_s19 = ssub.s32 %s654_s13, %s896_s16 }
   0xb   : > { %p53_p5 = scmp.eq.s32.totalorder %s444_s15, 0  ;;  %p37_p6 = scmp.eq.s32.totalorder %s34_s19, 0 }
   0xc   : > { %p476_p8 = scmp.lt.s32.totalorder %s658_s14, 2  ;;  %s732_s22 = sand.u32 1, %s646_s11  }
   0xd   : > { %p723_p7 = por %p53_p5, %p52_p4  ;;  %s462_s23 = sshll.u32 %s654_s13, 7 }
   0xe   : > { %s729_s21 = scalar_select %p37_p6, %s646_s11, %s39_s17  }
   0xf   : > { %s881_s20 = scalar_select %p723_p7, 1, 0 }
  0x10   : > { %s448_s24 = sshll.u32 %s732_s22, 3  ;;  %s739_s27 = scalar_lea.hbm %s876_s0, %s462_s23 }
  0x11   : > { %s134_s28 = scalar_lea.vmem [#allocation3], %s448_s24  ;;  %p743_p9 = pnand %p476_p8, %p716_p3 }
  0x12   : > { %s142_s29 = sshll.u32 %s134_s28, 4  ;;  %s131_s3 = scalar_lea.sflag [#allocation4], %s732_s22  ;;  %s747_s29 = int_to_ptr.vmem [resolvable:$true] %s142_s29 }
  0x13   : > { %s544_s4 = scalar_lea.hbm %s739_s27, 128  ;;  %p546_p11 = pneg %p743_p9 }
  0x14   : > { %p545_p10 = scmp.ne.s32.totalorder %s739_s27, %s544_s4  ;;  %s549_s7 = scalar_lea.hbm %s876_s0, 256 }
  0x15   : > { %p550_p0 = scmp.lt.u32.totalorder %s739_s27, %s876_s0  ;;  %p551_p1 = scmp.lt.u32.totalorder %s549_s7, %s544_s4 }
  0x16   : > { %p547_p12 = pnand %p546_p11, %p545_p10  ;;  %p553_p3 = scmp.lt.u32.totalorder %s544_s4, %s739_s27 }
  0x17   : > { %p552_p2 = por %p551_p1, %p550_p0 }
  0x18   : > { %p548_p13 = pneg %p547_p12 }
  0x19   : > { %p554_p4 = por %p553_p3, %p552_p2 }
  0x1b   : > { %p555_p5 = pnand %p554_p4, %p548_p13 }
  0x1d   : > { %558 = shalt.err (!%p555_p5)
}
  0x1e   : > { %s559_s15 = scalar_lea.vmem %s747_s29, 128  ;;  %s660_s17 = smov [#allocation3]  }
  0x1f   : > { %p560_p6 = scmp.ne.s32.totalorder %s747_s29, %s559_s15  ;;  %s564_s18 = sshll.u32 %s660_s17, 4  ;;  %s565_s18 = int_to_ptr.vmem [resolvable:$false] %s564_s18 }
  0x20   : > { %s566_s19 = scalar_lea.vmem %s565_s18, 256  ;;  %p567_p12 = scmp.lt.s32.totalorder %s747_s29, %s565_s18 }
  0x21   : > { %p562_p8 = pnand %p560_p6, %p546_p11  ;;  %p568_p0 = scmp.lt.s32.totalorder %s566_s19, %s559_s15 }
  0x23   : > { %p563_p10 = pneg %p562_p8  ;;  %p569_p1 = por %p568_p0, %p567_p12 }
  0x25   : > { %p570_p2 = pnand %p569_p1, %p563_p10 }
  0x27   : > { %573 = shalt.err (!%p570_p2)
}
  0x28   : > { %s661_s23 = smov 32   ;;  %s662_s24 = smov 2  }
  0x29   : > { %472 = dma.hbm_to_vmem [thread:$0]  (!%p743_p9), %s739_s27, 128, %s747_s29, %s131_s3, %s661_s23, %s661_s23, %s662_s24  }
  0x2a   : > { %p453_p13 = scmp.ge.s32.totalorder %s658_s14, 1  ;;  %p169_p3 = scmp.lt.s32.totalorder %s658_s14, 3 }
  0x2b   : > { %s451_s25 = sshll.u32 %s732_s22, 1  ;;  %s452_s28 = sshll.u32 %s654_s13, 5 }
  0x2c   : > { %p780_p4 = pnand %p453_p13, %p169_p3  ;;  %s156_s4 = scalar_lea.vmem [#allocation5], %s451_s25 }
  0x2d   : > { %s164_s5 = sshll.u32 %s156_s4, 4  ;;  %s788_s8 = scalar_lea.hbm %s877_s1, %s452_s28  ;;  %s165_s5 = int_to_ptr.vmem [resolvable:$true] %s164_s5 }
  0x2e   : > { %s883_s26 = scalar_select %p780_p4, 1, 0 }
  0x2f   : > { %s153_s27 = scalar_lea.sflag [#allocation6], %s732_s22  ;;  %s574_s29 = scalar_lea.hbm %s788_s8, 32 }
  0x30   : > { %p575_p5 = scmp.ne.s32.totalorder %s788_s8, %s574_s29  ;;  %s579_s15 = scalar_lea.hbm %s877_s1, 64 }
  0x31   : > { %p580_p10 = scmp.lt.u32.totalorder %s788_s8, %s877_s1  ;;  %p581_p12 = scmp.lt.u32.totalorder %s579_s15, %s574_s29 }
  0x32   : > { %p577_p6 = pnand %p575_p5, %p546_p11  ;;  %p583_p1 = scmp.lt.u32.totalorder %s574_s29, %s788_s8 }
  0x33   : > { %p582_p0 = por %p581_p12, %p580_p10 }
  0x34   : > { %p578_p8 = pneg %p577_p6 }
  0x35   : > { %p584_p2 = por %p583_p1, %p582_p0 }
  0x37   : > { %p585_p13 = pnand %p584_p2, %p578_p8 }
  0x39   : > { %588 = shalt.err (!%p585_p13)
}
  0x3a   : > { %s589_s22 = scalar_lea.vmem %s165_s5, 32  ;;  %s663_s19 = smov [#allocation5]  }
  0x3b   : > { %p590_p3 = scmp.ne.s32.totalorder %s165_s5, %s589_s22  ;;  %s594_s23 = sshll.u32 %s663_s19, 4  ;;  %s595_s23 = int_to_ptr.vmem [resolvable:$false] %s594_s23 }
  0x3c   : > { %s596_s24 = scalar_lea.vmem %s595_s23, 64  ;;  %p597_p7 = scmp.lt.s32.totalorder %s165_s5, %s595_s23 }
  0x3d   : > { %p592_p5 = pnand %p590_p3, %p546_p11  ;;  %p598_p4 = scmp.lt.s32.totalorder %s596_s24, %s589_s22 }
  0x3f   : > { %p593_p6 = pneg %p592_p5  ;;  %p599_p10 = por %p598_p4, %p597_p7 }
  0x41   : > { %p600_p12 = pnand %p599_p10, %p593_p6 }
  0x43   : > { %603 = shalt.err (!%p600_p12)
}
  0x44   : > { %475 = dma.hbm_to_vmem [thread:$0]  (!%p743_p9), %s788_s8, 32, %s165_s5, %s153_s27  }
  0x45   : > { %p884_p8 = scmp.ne.s32.totalorder %s883_s26, 0 }
  0x46   : > { %s175_s25 = sand.u32 (!%p884_p8), 1, %s642_s10   ;;  %p885_p11 = scmp.ne.s32.totalorder (!%p884_p8), %s881_s20, 0 }
  0x47   : > { %173 = sbr.rel (%p884_p8) target bundleno = 343 (0x157), region = 28  ;;  %s454_s28 = sshll.u32 (!%p884_p8), %s175_s25, 3 }
  0x48   : > { %s176_s4 = scalar_lea.sflag (!%p884_p8), [#allocation4], %s175_s25  ;;  %s179_s6 = scalar_lea.vmem (!%p884_p8), [#allocation3], %s454_s28 }
  0x4e   : > { %629 = dma.done.wait (%p885_p11), %s176_s4, 128  }
  0x4f   : > { %631 = vsyncadd (%p885_p11), %s176_s4, 4294967168  ;;  %s455_s7 = sshll.u32 %s175_s25, 1  ;;  %s185_s29 = scalar_lea.sflag [#allocation6], %s175_s25 }
  0x50   : > { %s188_s30 = scalar_lea.vmem [#allocation5], %s455_s7 }
  0x51   : > { %633 = dma.done.wait (%p885_p11), %s185_s29, 32  }
  0x52   : > { %635 = vsyncadd (%p885_p11), %s185_s29, 4294967264  ;;  %v664_v0 = vmov 0.0   ;;  %v821_v1 = vld [vmem:[%s179_s6] sm:$0x3]  ;;  %v823_v2 = vld [vmem:[%s179_s6 + $0x2] sm:$0x3] }
  0x53   : > { %219 = vst [vmem:[#allocation2] sm:$0x3] %v664_v0  ;;  %220 = vst [vmem:[#allocation2 + $0x2] sm:$0x3] %v664_v0  ;;  %v825_v3 = vld [vmem:[%s179_s6 + $0x4] sm:$0x3] }
  0x54   : > { %221 = vst [vmem:[#allocation2 + $0x4] sm:$0x3] %v664_v0  ;;  %222 = vst [vmem:[#allocation2 + $0x6] sm:$0x3] %v664_v0  ;;  %v827_v4 = vld [vmem:[%s179_s6 + $0x6] sm:$0x3] }
  0x55   : > { %v252_v5 = vand.u32 2147483647, %v821_v1  ;;  %v253_v6 = vand.u32 2147483647, %v823_v2  ;;  %v254_v7 = vand.u32 2147483647, %v825_v3 }
  0x56   : > { %v255_v8 = vand.u32 2147483647, %v827_v4  ;;  %v227_v19 = vld [vmem:[%s188_s30] sm:$0x3]  ;;  %v240_v32 = vmax.f32 %v821_v1, 0.0  ;;  %v241_v39 = vmax.f32 %v823_v2, 0.0 }
  0x57   : > { %v256_v9 = vsub.f32 0.0, %v252_v5  ;;  %v257_v10 = vsub.f32 0.0, %v253_v6  ;;  %v258_v11 = vsub.f32 0.0, %v254_v7  ;;  %vm228_vm0 = vcmp.eq.s32.totalorder %v227_v19, 0  ;;  %p212_p7 = scmp.lt.s32.totalorder %s650_s12, 1 }
  0x58   : > { %v259_v12 = vsub.f32 0.0, %v255_v8  ;;  %vm229_vm1 = vcmp.eq.s32.totalorder %v227_v19, 1  ;;  %vm230_vm2 = vcmp.eq.s32.totalorder %v227_v19, 2  ;;  %vm231_vm3 = vcmp.eq.s32.totalorder %v227_v19, 3 }
  0x59   : > { %v260_v13 = vmul.f32 1.442695, %v256_v9  ;;  %v262_v14 = vmul.f32 1.442695, %v257_v10  ;;  %v264_v15 = vmul.f32 1.442695, %v258_v11 }
  0x5a   : > { %v266_v16 = vmul.f32 1.442695, %v259_v12  ;;  %v456_v28 = vsel %vm228_vm0, 1.0, %v664_v0  ;;  %v457_v30 = vsel %vm229_vm1, 1.0, %v664_v0  ;;  %v458_v31 = vsel %vm230_vm2, 1.0, %v664_v0  ;;  %s898_s12 = smov (!%p212_p7, %s650_s12), 1 }
  0x5b   : > { %528 = vpow2.f32 %v260_v13  ;;  %v459_v35 = vsel %vm231_vm3, 1.0, %v664_v0  ;;  %v244_v36 = vmul.f32 %v456_v28, %v821_v1  ;;  %v245_v40 = vmul.f32 %v457_v30, %v823_v2  ;;  %v308_v2 = vld [vmem:[#allocation2] sm:$0x3]  ;;  %v309_v7 = vld [vmem:[#allocation2 + $0x2] sm:$0x3]  ;;  %s214_s5 = scalar_lea.vmem %s878_s2, %s898_s12 }
  0x5c   : > { %530 = vpow2.f32 %v262_v14  ;;  %v242_v43 = vmax.f32 %v825_v3, 0.0  ;;  %v246_v44 = vmul.f32 %v458_v31, %v825_v3  ;;  %v243_v46 = vmax.f32 %v827_v4, 0.0  ;;  %v310_v11 = vld [vmem:[#allocation2 + $0x4] sm:$0x3] }
  0x5d   : > { %532 = vpow2.f32 %v264_v15  ;;  %v247_v47 = vmul.f32 %v459_v35, %v827_v4  ;;  %v248_v51 = vsub.f32 %v240_v32, %v244_v36  ;;  %v249_v56 = vsub.f32 %v241_v39, %v245_v40  ;;  %v311_v15 = vld [vmem:[#allocation2 + $0x6] sm:$0x3] }
  0x5e   : > { %534 = vpow2.f32 %v266_v16  ;;  %v250_v61 = vsub.f32 %v242_v43, %v246_v44  ;;  %vm331_vm8 = vcmask 1041408   ;;  %vm349_vm9 = vcmask 0  }
  0x5f   : > { %v251_v4 = vsub.f32 %v243_v46, %v247_v47 }
  0x65   : > { %v529_v17 = vpop.eup %528 }
  0x66   : > { %v531_v18 = vpop.eup %530  ;;  %v268_v20 = vadd.f32 1.0, %v529_v17  ;;  %v271_v25 = vmul.f32 -0.5, %v529_v17  ;;  %v274_v37 = vand.u32 2147483647, %v529_v17 }
  0x67   : > { %v533_v21 = vpop.eup %532  ;;  %v277_v22 = vadd.f32 1.0, %v531_v18  ;;  %v280_v26 = vmul.f32 -0.5, %v531_v18  ;;  %v283_v41 = vand.u32 2147483647, %v531_v18 }
  0x68   : > { %v535_v23 = vpop.eup %534  ;;  %536 = vlog2.f32 %v268_v20  ;;  %v286_v24 = vadd.f32 1.0, %v533_v21  ;;  %v289_v29 = vmul.f32 -0.5, %v533_v21  ;;  %v272_v33 = vadd.f32 1.0, %v271_v25 }
  0x69   : > { %538 = vlog2.f32 %v277_v22  ;;  %v295_v27 = vadd.f32 1.0, %v535_v23  ;;  %v298_v34 = vmul.f32 -0.5, %v535_v23  ;;  %v281_v38 = vadd.f32 1.0, %v280_v26 }
  0x6a   : > { %540 = vlog2.f32 %v286_v24  ;;  %v290_v42 = vadd.f32 1.0, %v289_v29  ;;  %v292_v45 = vand.u32 2147483647, %v533_v21  ;;  %v273_v48 = vmul.f32 %v529_v17, %v272_v33 }
  0x6b   : > { %542 = vlog2.f32 %v295_v27  ;;  %v299_v49 = vadd.f32 1.0, %v298_v34  ;;  %vm841_vm4 = vcmp.lt.f32.partialorder %v274_v37, 0.0004427343  ;;  %v282_v53 = vmul.f32 %v531_v18, %v281_v38 }
  0x6c   : > { %v301_v54 = vand.u32 2147483647, %v535_v23  ;;  %vm845_vm5 = vcmp.lt.f32.partialorder %v283_v41, 0.0004427343  ;;  %v291_v59 = vmul.f32 %v533_v21, %v290_v42  ;;  %vm293_vm6 = vcmp.lt.f32.partialorder %v292_v45, 0.0004427343 }
  0x6d   : > { %v300_v1 = vmul.f32 %v535_v23, %v299_v49 }
  0x6e   : > { %vm302_vm7 = vcmp.lt.f32.partialorder %v301_v54, 0.0004427343 }
  0x72   : > { %v537_v50 = vpop.eup %536 }
  0x73   : > { %v539_v55 = vpop.eup %538  ;;  %v270_v57 = vmul.f32 0.6931472, %v537_v50 }
  0x74   : > { %v541_v60 = vpop.eup %540  ;;  %v279_v62 = vmul.f32 0.6931472, %v539_v55 }
  0x75   : > { %v276_v63 = vsel %vm841_vm4, %v273_v48, %v270_v57  ;;  %v288_v0 = vmul.f32 0.6931472, %v541_v60  ;;  %v543_v3 = vpop.eup %542 }
  0x76   : > { %v285_v5 = vsel %vm845_vm5, %v282_v53, %v279_v62  ;;  %v304_v6 = vadd.f32 %v276_v63, %v248_v51  ;;  %v297_v9 = vmul.f32 0.6931472, %v543_v3 }
  0x77   : > { %v294_v8 = vsel %vm293_vm6, %v291_v59, %v288_v0  ;;  %v305_v10 = vadd.f32 %v285_v5, %v249_v56 }
  0x78   : > { %v306_v12 = vadd.f32 %v294_v8, %v250_v61  ;;  %v312_v13 = vadd.f32 %v308_v2, %v304_v6  ;;  %v303_v14 = vsel %vm302_vm7, %v300_v1, %v297_v9 }
  0x79   : > { %v313_v16 = vadd.f32 %v309_v7, %v305_v10  ;;  %v307_v17 = vadd.f32 %v303_v14, %v251_v4 }
  0x7a   : > { %v314_v18 = vadd.f32 %v310_v11, %v306_v12  ;;  %316 = vst [vmem:[#allocation2] sm:$0x3] %v312_v13 }
  0x7b   : > { %317 = vst [vmem:[#allocation2 + $0x2] sm:$0x3] %v313_v16  ;;  %v315_v19 = vadd.f32 %v311_v15, %v307_v17 }
  0x7c   : > { %318 = vst [vmem:[#allocation2 + $0x4] sm:$0x3] %v314_v18 }
  0x7d   : > { %319 = vst [vmem:[#allocation2 + $0x6] sm:$0x3] %v315_v19 }
  0x82   : > { %v324_v20 = vld [vmem:[#allocation2 + $0x2] sm:$0x3] }
  0x83   : > { %v325_v21 = vld [vmem:[#allocation2 + $0x4] sm:$0x3]  ;;  %v333_v22 = vsel %vm331_vm8, %v324_v20, 0.0 }
  0x84   : > { %v335_v23 = vsel %vm331_vm8, %v325_v21, 0.0  ;;  %v326_v24 = vld [vmem:[#allocation2 + $0x6] sm:$0x3] }
  0x85   : > { %v336_v25 = vadd.f32 %v335_v23, %v333_v22  ;;  %v337_v26 = vsel %vm331_vm8, %v326_v24, 0.0 }
  0x87   : > { %v338_v27 = vadd.f32 %v337_v26, %v336_v25 }
  0x89   : > { %339 = vadd.xlane.f32.xlu0 %v338_v27 }
 0x116   : > { %v340_v28 = vpop.xlane.xlu0 %339 }
 0x117   : > { %v341_v29 = vrot.slane %v340_v28, 4 }
 0x119   : > { %v342_v30 = vadd.f32 %v341_v29, %v340_v28 }
 0x11b   : > { %v343_v31 = vrot.slane %v342_v30, 2 }
 0x11d   : > { %v344_v32 = vadd.f32 %v343_v31, %v342_v30 }
 0x11f   : > { %v345_v33 = vrot.slane %v344_v32, 1 }
 0x121   : > { %v346_v34 = vadd.f32 %v345_v33, %v344_v32 }
 0x123   : > { %463 = vpush %v346_v34 }
 0x154   : > { %s464_s8 = spop %463 }
 0x155   : > { %v348_v35 = vstv %s464_s8 }
 0x156   : > { %350 = vst.msk [vmem:[%s214_s5] sm:$0x1] %vm349_vm9, %v348_v35 }
 0x157 PF: > { %s18_s14 = sadd.s32 1, %s658_s14   ;;  %s890_s9 = smov %s642_s10 }
 0x158   : > { %p15_p9 = scmp.ge.s32.totalorder %s18_s14, 4   ;;  %s891_s10 = smov %s646_s11 }
 0x159   : > { %s892_s11 = smov %s729_s21  ;;  %s893_s12 = smov %s654_s13 }
 0x15a   : > { %s894_s13 = smov %s896_s16  ;;  %17 = sbr.rel (!%p15_p9) target bundleno = 6 (0x6), region = 89 }
 0x161   :  { %368 = vsyncpa [#allocation4], 1 }
 0x162   :  { %370 = vsyncpa [#allocation4 + $0x1], 1 }
 0x163   :  { %371 = vsyncpa [#allocation6], 1 }
 0x164   :  { %373 = vsyncpa [#allocation6 + $0x1], 1 }

</bundles_post_ra>
